<compile_context>
chip_gen: v6e
topology: v6e:2x2x1
jax: 0.10.0
libtpu: 0.0.40
codegen_flags: <defaults>
</compile_context>

<pallas_src>
import math
import functools
import jax
import jax.numpy as jnp
from jax.experimental import pallas as pl
from jax.experimental.pallas import tpu as pltpu


def _pad8(n):
    return ((n + 7) // 8) * 8


def init_linear(key, in_dim, out_dim):
    """Deterministic PyTorch-style init; weight stored as (in, out), bias (1, out)."""
    kw, kb = jax.random.split(key)
    bound = 1.0 / math.sqrt(in_dim)
    w = jax.random.uniform(kw, (in_dim, out_dim), jnp.float32, -bound, bound)
    b = jax.random.uniform(kb, (1, out_dim), jnp.float32, -bound, bound)
    return w, b


def build_packed_params(cfg, raw):
    """Fuse + pack all COR weights/biases into one (rows, lanes) f32 buffer.

    Returns (packed, layout) with layout[name] = (row_offset, rows, cols).
    All transforms are exact rearrangements of the PyTorch math:
      * concat inputs -> lane-concat + single / block-diagonal matmuls,
      * zero-padded encoder input -> pre-sliced encoder hidden weights,
      * mu/sigma hidden and output layers fused side-by-side / block-diagonal.
    Done once at init so the per-call graph is just the pallas_call.
    """
    ud = cfg["user_dim"]
    un = cfg["unobs_dim"]
    eh = cfg["encoder_hidden_dim"]
    z1h, z1d = cfg["z1_hidden_dim"], cfg["z1_dim"]
    z2h, z2d = cfg["z2_hidden_dim"], cfg["z2_dim"]

    zeros = lambda r, c: jnp.zeros((r, c), jnp.float32)

    # Encoder hidden: xenc = [obs | zeros] -> only the first user_dim rows of
    # the hidden weights ever matter; mu/sigma hidden layers fused side-by-side.
    w_enc_h = jnp.concatenate([raw["wmu_h"][:ud], raw["wsg_h"][:ud]], axis=1)  # (ud, 2*eh)
    b_enc_h = jnp.concatenate([raw["bmu_h"], raw["bsg_h"]], axis=1)            # (1, 2*eh)
    # Encoder outputs fused into ONE block-diagonal dot -> [mu_pre | sg_pre].
    w_enc_o = jnp.block([[raw["wmu_o"], zeros(eh, un)],
                         [zeros(eh, un), raw["wsg_o"]]])                       # (2*eh, 2*un)
    b_enc_o = jnp.concatenate([raw["bmu_o"], raw["bsg_o"]], axis=1)            # (1, 2*un)
    # Decoder hidden: ONE dot on the lane-concat [obs | unobs].
    w_dec_h = jnp.block([[raw["wz1h"][:ud], zeros(ud, z2h)],
                         [raw["wz1h"][ud:], raw["wz2h"]]])                     # (ud+un, z1h+z2h)
    b_dec_h = jnp.concatenate([raw["bz1h"], raw["bz2h"]], axis=1)              # (1, z1h+z2h)
    # Decoder outputs: ONE block-diagonal dot -> z12 = [z1 | z2].
    w_dec_o = jnp.block([[raw["wz1o"], zeros(z1h, z2d)],
                         [zeros(z2h, z1d), raw["wz2o"]]])                      # (z1h+z2h, z1d+z2d)
    b_dec_o = jnp.concatenate([raw["bz1o"], raw["bz2o"]], axis=1)
    # Predict head: ONE dot on [z1 | z2 | item] (wph rows already in that order).
    w_ph = raw["wph"]                                                          # (z1d+z2d+idim, phd)

    named = [
        ("w_enc_h", w_enc_h), ("w_enc_o", w_enc_o),
        ("w_dec_h", w_dec_h), ("w_dec_o", w_dec_o),
        ("w_ph", w_ph), ("w_po", raw["wpo"]),
        ("b_enc_h", b_enc_h), ("b_enc_o", b_enc_o),
        ("b_dec_h", b_dec_h), ("b_dec_o", b_dec_o),
        ("b_ph", raw["bph"]), ("b_po", raw["bpo"]),
    ]
    width = max(int(a.shape[1]) for _, a in named)
    layout = {}
    total = 0
    for name, a in named:
        r, c = int(a.shape[0]), int(a.shape[1])
        layout[name] = (total, r, c)
        total += _pad8(r)  # keep every block 8-sublane aligned (lane offset 0)
    packed = jnp.zeros((total, width), jnp.float32)
    for name, a in named:
        r0, r, c = layout[name]
        packed = packed.at[r0:r0 + r, 0:c].set(a.astype(jnp.float32))
    return packed, layout


def _cor_kernel(xin_ref, w_ref, out_ref, *, layout, dims):
    f32 = jnp.float32
    ud, idim, un = dims["ud"], dims["idim"], dims["un"]

    def blk(name):
        r0, r, c = layout[name]
        return w_ref[r0:r0 + r, 0:c]  # static, lane-offset-0 slice of the packed tile

    # Single fused activation tile; split with value slices (cheap VPU selects).
    xin = xin_ref[...]                         # (tb, ud+idim+un)
    obs = xin[:, :ud]
    item = xin[:, ud:ud + idim]
    eps = xin[:, ud + idim:ud + idim + un]

    # ---- Encoder: 2 dots (hidden fused mu|sigma, output block-diagonal) ----
    h = jnp.tanh(jnp.dot(obs, blk("w_enc_h"), preferred_element_type=f32)
                 + blk("b_enc_h"))                                  # (tb, 2*eh) = [h_mu | h_sg]
    s = jax.nn.sigmoid(jnp.dot(h, blk("w_enc_o"), preferred_element_type=f32)
                       + blk("b_enc_o"))                            # (tb, 2*un) = [mu | sigma]
    mu = s[:, :un]
    sigma = s[:, un:]
    # torch.normal(mu, sigma) reparameterized: eps ~ N(0, 1) supplied as input.
    unobs = mu + sigma * eps                                        # (tb, un)

    # ---- Decoder: 2 dots (fused hidden on [obs|unobs], block-diagonal output) ----
    du = jnp.concatenate([obs, unobs], axis=-1)                     # (tb, ud+un)
    dh = jnp.tanh(jnp.dot(du, blk("w_dec_h"), preferred_element_type=f32)
                  + blk("b_dec_h"))                                 # (tb, z1h+z2h)
    z12 = (jnp.dot(dh, blk("w_dec_o"), preferred_element_type=f32)
           + blk("b_dec_o"))                                        # (tb, z1d+z2d) = [z1 | z2]

    # ---- Predict head: 2 dots on [z1 | z2 | item] ----
    pc = jnp.concatenate([z12, item], axis=-1)                      # (tb, z1d+z2d+idim)
    p = jnp.tanh(jnp.dot(pc, blk("w_ph"), preferred_element_type=f32)
                 + blk("b_ph"))                                     # (tb, phd)
    out_ref[...] = (jnp.dot(p, blk("w_po"), preferred_element_type=f32)
                    + blk("b_po"))                                  # (tb, 2)


def _choose_block(B, cap=1024):
    """Pick (block_b, steps): block_b multiple of 8, large (<=cap), and >=2
    grid steps (even count when possible) so v7x can shard over both TCs."""
    Bp = _pad8(B)
    if Bp <= 8:
        return 8, 1
    block = min(cap, _pad8(pl.cdiv(Bp, 2)))
    steps = pl.cdiv(Bp, block)
    if steps > 1 and steps % 2 == 1:       # prefer even step count (megacore)
        block = _pad8(pl.cdiv(Bp, steps + 1))
        steps = pl.cdiv(Bp, block)
    return block, steps


def cor_forward(obs_feature, item_feature, eps, packed, layout, *, block_b=None):
    """COR.forward: returns (B, 2) logits."""
    B, ud = obs_feature.shape
    idim = item_feature.shape[1]
    un = eps.shape[1]

    # Fuse the three activation streams into one (B, ud+idim+un) array: 1 DMA/step.
    xin = jnp.concatenate(
        [obs_feature, item_feature, eps], axis=-1).astype(jnp.float32)

    if block_b is None:
        block_b, steps = _choose_block(B)
    else:
        block_b = max(8, _pad8(block_b))
        steps = pl.cdiv(B, block_b)
    b_pad = steps * block_b
    if b_pad != B:  # ragged batch: zero-pad instead of a full-batch block
        xin = jnp.pad(xin, ((0, b_pad - B), (0, 0)))

    kernel = functools.partial(_cor_kernel, layout=layout,
                               dims=dict(ud=ud, idim=idim, un=un))

    out = pl.pallas_call(
        kernel,
        out_shape=jax.ShapeDtypeStruct((b_pad, 2), jnp.float32),
        grid=(steps,),
        in_specs=[
            pl.BlockSpec((block_b, ud + idim + un), lambda b: (b, 0)),
            pl.BlockSpec(packed.shape, lambda b: (0, 0)),  # weights stay VMEM-resident
        ],
        out_specs=pl.BlockSpec((block_b, 2), lambda b: (b, 0)),
        compiler_params=pltpu.CompilerParams(
            dimension_semantics=("parallel",),  # batch grid -> both TCs on v7x
        ),
    )(xin, packed)
    return out[:B]


if __name__ == "__main__":
    cfg = dict(user_dim=8, item_dim=8, unobs_dim=8, encoder_hidden_dim=16,
               z1_hidden_dim=16, z1_dim=8, z2_hidden_dim=16, z2_dim=8,
               predict_hidden_dim=16)
    B = 16  # heuristic tiles this into two 8-row blocks -> grid of 2

    root = jax.random.PRNGKey(0)
    keys = jax.random.split(root, 16)

    wmu_h, bmu_h = init_linear(keys[0], cfg["user_dim"] + cfg["item_dim"], cfg["encoder_hidden_dim"])
    wmu_o, bmu_o = init_linear(keys[1], cfg["encoder_hidden_dim"], cfg["unobs_dim"])
    wsg_h, bsg_h = init_linear(keys[2], cfg["user_dim"] + cfg["item_dim"], cfg["encoder_hidden_dim"])
    wsg_o, bsg_o = init_linear(keys[3], cfg["encoder_hidden_dim"], cfg["unobs_dim"])
    wz1h, bz1h = init_linear(keys[4], cfg["user_dim"] + cfg["unobs_dim"], cfg["z1_hidden_dim"])
    wz1o, bz1o = init_linear(keys[5], cfg["z1_hidden_dim"], cfg["z1_dim"])
    wz2h, bz2h = init_linear(keys[6], cfg["unobs_dim"], cfg["z2_hidden_dim"])
    wz2o, bz2o = init_linear(keys[7], cfg["z2_hidden_dim"], cfg["z2_dim"])
    wph, bph = init_linear(keys[8], cfg["z1_dim"] + cfg["z2_dim"] + cfg["item_dim"],
                           cfg["predict_hidden_dim"])
    wpo, bpo = init_linear(keys[9], cfg["predict_hidden_dim"], 2)

    raw = dict(wmu_h=wmu_h, bmu_h=bmu_h, wmu_o=wmu_o, bmu_o=bmu_o,
               wsg_h=wsg_h, bsg_h=bsg_h, wsg_o=wsg_o, bsg_o=bsg_o,
               wz1h=wz1h, bz1h=bz1h, wz1o=wz1o, bz1o=bz1o,
               wz2h=wz2h, bz2h=bz2h, wz2o=wz2o, bz2o=bz2o,
               wph=wph, bph=bph, wpo=wpo, bpo=bpo)

    # Pack / fuse once at init (not per call).
    packed, layout = build_packed_params(cfg, raw)
    packed = jax.block_until_ready(packed)

    # Deterministic example inputs.
    obs_feature = jax.random.normal(keys[10], (B, cfg["user_dim"]), jnp.float32)
    item_feature = jax.random.normal(keys[11], (B, cfg["item_dim"]), jnp.float32)
    # torch.normal(mu, sigma) sample, reparameterized: eps drawn outside,
    # unobs = mu + sigma * eps computed in-kernel (same distribution).
    eps = jax.random.normal(keys[12], (B, cfg["unobs_dim"]), jnp.float32)

    score = cor_forward(obs_feature, item_feature, eps, packed, layout)
    jax.block_until_ready(score)

    # Reference in plain JAX mirroring the original (unfused) PyTorch math.
    def ref():
        xenc = jnp.concatenate(
            [obs_feature, jnp.zeros((B, cfg["item_dim"]), jnp.float32)], axis=-1)
        mu = jax.nn.sigmoid(jnp.tanh(xenc @ wmu_h + bmu_h) @ wmu_o + bmu_o)
        sg = jax.nn.sigmoid(jnp.tanh(xenc @ wsg_h + bsg_h) @ wsg_o + bsg_o)
        un = mu + sg * eps
        z1 = jnp.tanh(jnp.concatenate([obs_feature, un], -1) @ wz1h + bz1h) @ wz1o + bz1o
        z2 = jnp.tanh(un @ wz2h + bz2h) @ wz2o + bz2o
        cat = jnp.concatenate([z1, z2, item_feature], -1)
        return jnp.tanh(cat @ wph + bph) @ wpo + bpo

    assert score.shape == (B, 2)
    assert jnp.allclose(score, ref(), atol=1e-5), "mismatch vs reference"
    print("KERNEL_OK")
</pallas_src>

<mosaic_0001>
module attributes {stable_mosaic.version = 11 : i64} {
  func.func @_cor_kernel(%arg0: i32, %arg1: memref<8x24xf32, #tpu.memory_space<vmem>>, %arg2: memref<176x32xf32, #tpu.memory_space<vmem>>, %arg3: memref<8x2xf32, #tpu.memory_space<vmem>>) attributes {dimension_semantics = [#tpu.dimension_semantics<parallel>], iteration_bounds = array<i64: 2>, scalar_prefetch = 0 : i64, scratch_operands = 0 : i64, tpu.core_type = #tpu.core_type<tc>, window_params = [{transform_indices = @transform_0, window_bounds = array<i64: 8, 24>}, {pipeline_mode = #tpu.pipeline_mode<synchronous>, transform_indices = @transform_1, window_bounds = array<i64: 176, 32>}, {transform_indices = @transform_2, window_bounds = array<i64: 8, 2>}]} {
    %c0 = arith.constant 0 : index
    %c0_0 = arith.constant 0 : index
    %0 = vector.load %arg1[%c0, %c0_0] : memref<8x24xf32, #tpu.memory_space<vmem>>, vector<8x24xf32>
    %1 = vector.extract_strided_slice %0 {offsets = [0, 0], sizes = [8, 8], strides = [1, 1]} : vector<8x24xf32> to vector<8x8xf32>
    %2 = vector.extract_strided_slice %0 {offsets = [0, 8], sizes = [8, 8], strides = [1, 1]} : vector<8x24xf32> to vector<8x8xf32>
    %3 = vector.extract_strided_slice %0 {offsets = [0, 16], sizes = [8, 8], strides = [1, 1]} : vector<8x24xf32> to vector<8x8xf32>
    %c0_1 = arith.constant 0 : index
    %c0_2 = arith.constant 0 : index
    %4 = vector.load %arg2[%c0_1, %c0_2] : memref<176x32xf32, #tpu.memory_space<vmem>>, vector<8x32xf32>
    %cst = arith.constant dense<0.000000e+00> : vector<8x32xf32>
    %5 = tpu.matmul %1, %4, %cst {dimension_numbers = #tpu.dot_dimension_numbers<[1], [0], [0], [1], [0, 0, 1, 1], [], []>} : vector<8x8xf32>, vector<8x32xf32>, vector<8x32xf32> -> vector<8x32xf32>
    %c128 = arith.constant 128 : index
    %c0_3 = arith.constant 0 : index
    %6 = vector.load %arg2[%c128, %c0_3] : memref<176x32xf32, #tpu.memory_space<vmem>>, vector<1x32xf32>
    %7 = vector.broadcast %6 : vector<1x32xf32> to vector<8x32xf32>
    %8 = arith.addf %5, %7 : vector<8x32xf32>
    %9 = math.tanh %8 : vector<8x32xf32>
    %c8 = arith.constant 8 : index
    %c0_4 = arith.constant 0 : index
    %10 = vector.load %arg2[%c8, %c0_4] : memref<176x32xf32, #tpu.memory_space<vmem>>, vector<32x16xf32>
    %cst_5 = arith.constant dense<0.000000e+00> : vector<8x16xf32>
    %11 = tpu.matmul %9, %10, %cst_5 {dimension_numbers = #tpu.dot_dimension_numbers<[1], [0], [0], [1], [0, 0, 1, 1], [], []>} : vector<8x32xf32>, vector<32x16xf32>, vector<8x16xf32> -> vector<8x16xf32>
    %c136 = arith.constant 136 : index
    %c0_6 = arith.constant 0 : index
    %12 = vector.load %arg2[%c136, %c0_6] : memref<176x32xf32, #tpu.memory_space<vmem>>, vector<1x16xf32>
    %13 = vector.broadcast %12 : vector<1x16xf32> to vector<8x16xf32>
    %14 = arith.addf %11, %13 : vector<8x16xf32>
    %15 = arith.negf %14 : vector<8x16xf32>
    %16 = math.exp %15 : vector<8x16xf32>
    %cst_7 = arith.constant 1.000000e+00 : f32
    %17 = vector.broadcast %cst_7 : f32 to vector<8x16xf32>
    %18 = arith.addf %17, %16 : vector<8x16xf32>
    %19 = arith.divf %17, %18 : vector<8x16xf32>
    %20 = vector.extract_strided_slice %19 {offsets = [0, 0], sizes = [8, 8], strides = [1, 1]} : vector<8x16xf32> to vector<8x8xf32>
    %21 = vector.extract_strided_slice %19 {offsets = [0, 8], sizes = [8, 8], strides = [1, 1]} : vector<8x16xf32> to vector<8x8xf32>
    %22 = arith.mulf %21, %3 : vector<8x8xf32>
    %23 = arith.addf %20, %22 : vector<8x8xf32>
    %24 = tpu.concatenate %1, %23 in 1 : vector<8x8xf32>, vector<8x8xf32> -> vector<8x16xf32>
    %c40 = arith.constant 40 : index
    %c0_8 = arith.constant 0 : index
    %25 = vector.load %arg2[%c40, %c0_8] : memref<176x32xf32, #tpu.memory_space<vmem>>, vector<16x32xf32>
    %cst_9 = arith.constant dense<0.000000e+00> : vector<8x32xf32>
    %26 = tpu.matmul %24, %25, %cst_9 {dimension_numbers = #tpu.dot_dimension_numbers<[1], [0], [0], [1], [0, 0, 1, 1], [], []>} : vector<8x16xf32>, vector<16x32xf32>, vector<8x32xf32> -> vector<8x32xf32>
    %c144 = arith.constant 144 : index
    %c0_10 = arith.constant 0 : index
    %27 = vector.load %arg2[%c144, %c0_10] : memref<176x32xf32, #tpu.memory_space<vmem>>, vector<1x32xf32>
    %28 = vector.broadcast %27 : vector<1x32xf32> to vector<8x32xf32>
    %29 = arith.addf %26, %28 : vector<8x32xf32>
    %30 = math.tanh %29 : vector<8x32xf32>
    %c56 = arith.constant 56 : index
    %c0_11 = arith.constant 0 : index
    %31 = vector.load %arg2[%c56, %c0_11] : memref<176x32xf32, #tpu.memory_space<vmem>>, vector<32x16xf32>
    %cst_12 = arith.constant dense<0.000000e+00> : vector<8x16xf32>
    %32 = tpu.matmul %30, %31, %cst_12 {dimension_numbers = #tpu.dot_dimension_numbers<[1], [0], [0], [1], [0, 0, 1, 1], [], []>} : vector<8x32xf32>, vector<32x16xf32>, vector<8x16xf32> -> vector<8x16xf32>
    %c152 = arith.constant 152 : index
    %c0_13 = arith.constant 0 : index
    %33 = vector.load %arg2[%c152, %c0_13] : memref<176x32xf32, #tpu.memory_space<vmem>>, vector<1x16xf32>
    %34 = vector.broadcast %33 : vector<1x16xf32> to vector<8x16xf32>
    %35 = arith.addf %32, %34 : vector<8x16xf32>
    %36 = tpu.concatenate %35, %2 in 1 : vector<8x16xf32>, vector<8x8xf32> -> vector<8x24xf32>
    %c88 = arith.constant 88 : index
    %c0_14 = arith.constant 0 : index
    %37 = vector.load %arg2[%c88, %c0_14] : memref<176x32xf32, #tpu.memory_space<vmem>>, vector<24x16xf32>
    %cst_15 = arith.constant dense<0.000000e+00> : vector<8x16xf32>
    %38 = tpu.matmul %36, %37, %cst_15 {dimension_numbers = #tpu.dot_dimension_numbers<[1], [0], [0], [1], [0, 0, 1, 1], [], []>} : vector<8x24xf32>, vector<24x16xf32>, vector<8x16xf32> -> vector<8x16xf32>
    %c160 = arith.constant 160 : index
    %c0_16 = arith.constant 0 : index
    %39 = vector.load %arg2[%c160, %c0_16] : memref<176x32xf32, #tpu.memory_space<vmem>>, vector<1x16xf32>
    %40 = vector.broadcast %39 : vector<1x16xf32> to vector<8x16xf32>
    %41 = arith.addf %38, %40 : vector<8x16xf32>
    %42 = math.tanh %41 : vector<8x16xf32>
    %c112 = arith.constant 112 : index
    %c0_17 = arith.constant 0 : index
    %43 = vector.load %arg2[%c112, %c0_17] : memref<176x32xf32, #tpu.memory_space<vmem>>, vector<16x2xf32>
    %cst_18 = arith.constant dense<0.000000e+00> : vector<8x2xf32>
    %44 = tpu.matmul %42, %43, %cst_18 {dimension_numbers = #tpu.dot_dimension_numbers<[1], [0], [0], [1], [0, 0, 1, 1], [], []>} : vector<8x16xf32>, vector<16x2xf32>, vector<8x2xf32> -> vector<8x2xf32>
    %c168 = arith.constant 168 : index
    %c0_19 = arith.constant 0 : index
    %45 = vector.load %arg2[%c168, %c0_19] : memref<176x32xf32, #tpu.memory_space<vmem>>, vector<1x2xf32>
    %46 = vector.broadcast %45 : vector<1x2xf32> to vector<8x2xf32>
    %47 = arith.addf %44, %46 : vector<8x2xf32>
    %c0_20 = arith.constant 0 : index
    %c0_21 = arith.constant 0 : index
    %48 = vector.load %arg3[%c0_20, %c0_21] : memref<8x2xf32, #tpu.memory_space<vmem>>, vector<8x2xf32>
    tpu.vector_store %arg3[%c0_20, %c0_21], %47 {strides = array<i32>} : memref<8x2xf32, #tpu.memory_space<vmem>>, vector<8x2xf32>,
    return
  }
  func.func @transform_0(%arg0: i32) -> (i32, i32) {
    %c0_i32 = arith.constant 0 : i32
    %c0_i32_0 = arith.constant 0 : i32
    return %arg0, %c0_i32 : i32, i32
  }
  func.func @transform_1(%arg0: i32) -> (i32, i32) {
    %c0_i32 = arith.constant 0 : i32
    %c0_i32_0 = arith.constant 0 : i32
    %c0_i32_1 = arith.constant 0 : i32
    return %c0_i32, %c0_i32_0 : i32, i32
  }
  func.func @transform_2(%arg0: i32) -> (i32, i32) {
    %c0_i32 = arith.constant 0 : i32
    %c0_i32_0 = arith.constant 0 : i32
    return %arg0, %c0_i32 : i32, i32
  }
}

</mosaic_0001>

<bundles_post_ra>
// kernel: tpu_custom_call.1
= control target key start
LH: loop header
LB: loop body
LE: loop exit
PB: predicated region body
PF: predicated region fallthrough
CT: control target
= control target key end

     0   :  { %s853_s9 = smov 0   ;;  %s978_s0 = inlined_call_operand.vmem [shape: f32[16,24], index: 0, kind: input, shape index: {}]   ;;  %s979_s1 = inlined_call_operand.vmem [shape: f32[176,32], index: 1, kind: input, shape index: {}]   ;;  %s980_s2 = inlined_call_operand.vmem [shape: f32[16,2], index: 2, kind: output, shape index: {}]  }
   0x1 LB: > { %s710_s10 = sadd.s32 4294967295, %s832_s9   ;;  %p714_p0 = scmp.ge.s32.totalorder %s832_s9, 1  ;;  %s832_s9 = sphi %s853_s9, %s12_s9  }
   0x2   : > { %p111_p1 = scmp.lt.s32.totalorder %s832_s9, 3 }
   0x4   : > { %p112_p2 = pnand %p714_p0, %p111_p1 }
   0x5   : > { %p131_p3 = scmp.lt.s32.totalorder (!%p112_p2), %s710_s10, 1  ;;  %s836_s25 = smov (!%p112_p2), 120  }
   0x6   : > { %115 = sbr.rel (%p112_p2) target bundleno = 1496 (0x5d8), region = 28  ;;  %s837_s6 = smov (!%p112_p2), 8  }
   0xb   : > { %v140_v0 = vld [vmem:[%s979_s1] sm:$0xff]  ;;  %v834_v1 = vmov 0.0   ;;  %vm835_vm0 = vmmov 0   ;;  %s982_s10 = smov (!%p131_p3, %s710_s10), 1  ;;  %vm146_vm1 = vcmask 64512   ;;  %v223_v4 = vld [vmem:[%s979_s1 + $0x18] sm:$0xff] }
   0xc   : > { %754 = vmatprep.subr.mxu1 %v834_v1  ;;  %756 = vmatprep.mubr.msk.f32.mxu1 %vm835_vm0, %v834_v1  ;;  %s715_s13 = sshll.u32 %s982_s10, 3  ;;  %v224_v3 = vld [vmem:[%s979_s1 + $0x20] sm:$0xff]  ;;  %v222_v5 = vld [vmem:[%s979_s1 + $0x10] sm:$0xff]  ;;  %v221_v6 = vld [vmem:[%s979_s1 + $0x8] sm:$0xff]  ;;  %vm230_vm2 = vcmask 261120   ;;  %vm331_vm3 = vcmask 130048  }
   0xd   : > { %755 = vmatpush3.msra.mxu1 %v140_v0  ;;  %770 = vmatprep.subr.mxu0 %v834_v1  ;;  %s134_s16 = scalar_lea.vmem %s978_s0, %s715_s13  ;;  %v717_v7 = vld [vmem:[%s979_s1 + $0x80] ss:$0 sm:$0xff]  ;;  %v719_v12 = vld [vmem:[%s979_s1 + $0x88] ss:$0 sm:$0xff]  ;;  %v325_v19 = vld [vmem:[%s979_s1 + $0x30] sm:$0xff]  ;;  %vm500_vm4 = vcmask 195584   ;;  %s138_s12 = scalar_lea.vmem %s980_s2, %s715_s13 }
   0xe   : > { %759 = vmatprep.subr.mxu1 %v834_v1  ;;  %774 = vmatprep.mubr.msk.f32.mxu0 %vm835_vm0, %v834_v1  ;;  %v139_v2 = vld [vmem:[%s134_s16] sm:$0xff]  ;;  %v324_v23 = vld [vmem:[%s979_s1 + $0x28] sm:$0xff]  ;;  %v409_v28 = vld [vmem:[%s979_s1 + $0x50] sm:$0xff]  ;;  %vm655_vm5 = vcmask 15360  }
   0xf   : > { %757 = vmatmul.mubr.msk.f32.vlgmr.msra.gmra.mxu1 %vm146_vm1, %v139_v2  ;;  %310 = vrot.lane.b32.xlu0 %v139_v2, %s836_s25  ;;  %v408_v29 = vld [vmem:[%s979_s1 + $0x48] sm:$0xff]  ;;  %v407_v30 = vld [vmem:[%s979_s1 + $0x40] sm:$0xff]  ;;  %v406_v31 = vld [vmem:[%s979_s1 + $0x38] sm:$0xff] }
  0x10   : > { %767 = vmatprep.mubr.msk.f32.mxu1 %vm835_vm0, %v834_v1  ;;  %760 = vmatpush3.msra.mxu1 %v224_v3  ;;  %v494_v32 = vld [vmem:[%s979_s1 + $0x68] sm:$0xff]  ;;  %v722_v33 = vld [vmem:[%s979_s1 + $0x90] ss:$0 sm:$0xff]  ;;  %v493_v38 = vld [vmem:[%s979_s1 + $0x60] sm:$0xff] }
  0x11   : > { %761 = vmatprep.subr.mxu1 %v834_v1  ;;  %771 = vmatpush3.msra.mxu0 %v325_v19  ;;  %v492_v39 = vld [vmem:[%s979_s1 + $0x58] sm:$0xff]  ;;  %v575_v47 = vld [vmem:[%s979_s1 + $0x70] sm:$0xff]  ;;  %v726_v48 = vld [vmem:[%s979_s1 + $0xa0] ss:$0 sm:$0xff] }
  0x12   : > { %762 = vmatpush3.msra.mxu1 %v223_v4  ;;  %772 = vmatprep.subr.mxu0 %v834_v1  ;;  %v724_v40 = vld [vmem:[%s979_s1 + $0x98] ss:$0 sm:$0xff]  ;;  %v728_v53 = vld [vmem:[%s979_s1 + $0xa8] ss:$0 sm:$0xff] }
  0x13   : > { %763 = vmatprep.subr.mxu1 %v834_v1  ;;  %773 = vmatpush3.msra.mxu0 %v324_v23  ;;  %v576_v46 = vld [vmem:[%s979_s1 + $0x78] sm:$0xff] }
  0x14   : > { %764 = vmatpush3.msra.mxu1 %v222_v5  ;;  %777 = vmatprep.subr.mxu0 %v834_v1 }
  0x15   : > { %765 = vmatprep.subr.mxu1 %v834_v1 }
  0x16   : > { %766 = vmatpush3.msra.mxu1 %v221_v6 }
  0x17   : > { %788 = vmatprep.subr.mxu1 %v834_v1 }
  0x81   : > { %v311_v20 = vpop.permute.xlu0 %310 }
  0xcf   : > { %v216_v8 = vpop.f32.mrf.mxu1 }
  0xd0   : > { %v217_v9 = vadd.f32 %v717_v7, %v216_v8 }
  0xd1   : > { %v758_v10 = vpop.f32.mrf.mxu1 }
  0xd2   : > { %816 = vtanh.f32 %v217_v9 }
  0xdf   : > { %v817_v11 = vpop.eup %816 }
  0xe0   : > { %768 = vmatmul.mubr.msk.f32.vlgmr.msra.gmra.mxu1 %vm230_vm2, %v817_v11 }
  0xe1   : > { %794 = vmatprep.mubr.msk.f32.mxu1 %vm835_vm0, %v834_v1  ;;  %789 = vmatpush3.msra.mxu1 %v494_v32 }
  0xe2   : > { %790 = vmatprep.subr.mxu1 %v834_v1 }
  0xe3   : > { %791 = vmatpush3.msra.mxu1 %v493_v38 }
  0xe4   : > { %792 = vmatprep.subr.mxu1 %v834_v1 }
  0xe5   : > { %793 = vmatpush3.msra.mxu1 %v492_v39 }
 0x1a0   : > { %v300_v13 = vpop.f32.mrf.mxu1 }
 0x1a1   : > { %v301_v14 = vadd.f32 %v719_v12, %v300_v13 }
 0x1a2   : > { %v769_v15 = vpop.f32.mrf.mxu1 }
 0x1a3   : > { %v721_v16 = vmul.f32 -1.442695, %v301_v14 }
 0x1a5   : > { %818 = vpow2.f32 %v721_v16 }
 0x1b2   : > { %v819_v17 = vpop.eup %818 }
 0x1b3   : > { %v307_v18 = vadd.f32 1.0, %v819_v17 }
 0x1b5   : > { %820 = vrcp.f32 %v307_v18 }
 0x1c2   : > { %v821_v21 = vpop.eup %820 }
 0x1c3   : > { %v313_v22 = vmul.f32 %v821_v21, %v311_v20 }
 0x1c5   : > { %315 = vrot.lane.b32.xlu0 %v313_v22, %s836_s25 }
 0x237   : > { %v316_v24 = vpop.permute.xlu0 %315 }
 0x238   : > { %v318_v25 = vadd.f32 %v821_v21, %v316_v24 }
 0x23a   : > { %320 = vrot.lane.b32.xlu1 %v318_v25, %s837_s6 }
 0x23e   : > { %488 = vrot.lane.b32.xlu1 %v139_v2, %s837_s6 }
 0x2ac   : > { %v321_v26 = vpop.permute.xlu1 %320 }
 0x2ad   : > { %v323_v27 = vsel %vm146_vm1, %v139_v2, %v321_v26 }
 0x2ae   : > { %775 = vmatmul.mubr.msk.f32.vlgmr.msra.gmra.mxu0 %vm331_vm3, %v323_v27 }
 0x2af   : > { %785 = vmatprep.mubr.msk.f32.mxu0 %vm835_vm0, %v834_v1  ;;  %778 = vmatpush3.msra.mxu0 %v409_v28 }
 0x2b0   : > { %779 = vmatprep.subr.mxu0 %v834_v1  ;;  %v489_v42 = vpop.permute.xlu1 %488 }
 0x2b1   : > { %780 = vmatpush3.msra.mxu0 %v408_v29 }
 0x2b2   : > { %781 = vmatprep.subr.mxu0 %v834_v1 }
 0x2b3   : > { %782 = vmatpush3.msra.mxu0 %v407_v30 }
 0x2b4   : > { %783 = vmatprep.subr.mxu0 %v834_v1 }
 0x2b5   : > { %784 = vmatpush3.msra.mxu0 %v406_v31 }
 0x2b6   : > { %797 = vmatprep.subr.mxu0 %v834_v1 }
 0x36e   : > { %v401_v34 = vpop.f32.mrf.mxu0 }
 0x36f   : > { %v402_v35 = vadd.f32 %v722_v33, %v401_v34 }
 0x370   : > { %v776_v36 = vpop.f32.mrf.mxu0 }
 0x371   : > { %822 = vtanh.f32 %v402_v35 }
 0x37e   : > { %v823_v37 = vpop.eup %822 }
 0x37f   : > { %786 = vmatmul.mubr.msk.f32.vlgmr.msra.gmra.mxu0 %vm230_vm2, %v823_v37 }
 0x380   : > { %801 = vmatprep.mubr.msk.f32.mxu0 %vm835_vm0, %v834_v1  ;;  %798 = vmatpush3.msra.mxu0 %v576_v46 }
 0x381   : > { %799 = vmatprep.subr.mxu0 %v834_v1 }
 0x382   : > { %800 = vmatpush3.msra.mxu0 %v575_v47 }
 0x43f   : > { %v484_v41 = vpop.f32.mrf.mxu0 }
 0x440   : > { %v485_v43 = vadd.f32 %v724_v40, %v484_v41 }
 0x441   : > { %v787_v44 = vpop.f32.mrf.mxu0 }
 0x442   : > { %v491_v45 = vsel %vm331_vm3, %v485_v43, %v489_v42 }
 0x443   : > { %795 = vmatmul.mubr.msk.f32.vlgmr.msra.gmra.mxu1 %vm500_vm4, %v491_v45 }
 0x503   : > { %v570_v49 = vpop.f32.mrf.mxu1 }
 0x504   : > { %v571_v50 = vadd.f32 %v726_v48, %v570_v49 }
 0x505   : > { %v796_v51 = vpop.f32.mrf.mxu1 }
 0x506   : > { %824 = vtanh.f32 %v571_v50 }
 0x513   : > { %v825_v52 = vpop.eup %824 }
 0x514   : > { %802 = vmatmul.mubr.msk.f32.vlgmr.msra.gmra.mxu0 %vm331_vm3, %v825_v52 }
 0x5d4   : > { %v651_v54 = vpop.f32.mrf.mxu0 }
 0x5d5   : > { %v652_v55 = vadd.f32 %v728_v53, %v651_v54 }
 0x5d6   : > { %v803_v56 = vpop.f32.mrf.mxu0 }
 0x5d7   : > { %656 = vst.msk [vmem:[%s138_s12] sm:$0xff] %vm655_vm5, %v652_v55 }
 0x5d8 PF: > { %s12_s9 = sadd.s32 1, %s832_s9  }
 0x5d9   : > { %p9_p4 = scmp.ge.s32.totalorder %s12_s9, 4  }
 0x5db   :  { %11 = sbr.rel (!%p9_p4) target bundleno = 1 (0x1), region = 58 }

</bundles_post_ra>
